<compile_context>
chip_gen: v6e
topology: v6e:2x2x1
jax: 0.10.0
libtpu: 0.0.40
codegen_flags: <defaults>
</compile_context>

<pallas_src>
import jax
import jax.numpy as jnp
from jax import lax
from jax.experimental import pallas as pl
from jax.experimental.pallas import tpu as pltpu


def conv_post_kernel(x_ref, w_ref, b_ref, o_ref):
    """9-tap VPU stride-2 conv with fused post-ops.

    x_ref: (4, H//2, W//2) f32 VMEM, parity-split input:
           x_ref[2*ph + pw, i, j] == x[2*i + ph, 2*j + pw]
    w_ref: (9,) f32 SMEM, 3x3 conv kernel flattened row-major
    b_ref: (1,) f32 SMEM, bias with the +0.1/-0.2 post-ops folded in (bias - 0.1)
    o_ref: (OH, OW) f32 VMEM
    """
    oh, ow = o_ref.shape
    x = x_ref[...]                                           # (4, H//2, W//2)
    acc = jnp.full((oh, ow), b_ref[0], dtype=jnp.float32)    # bias (already folded)
    for kh in range(3):
        for kw in range(3):
            p = (kh % 2) * 2 + (kw % 2)      # which parity sub-grid
            qh, qw = kh // 2, kw // 2        # offset inside the sub-grid
            acc = acc + w_ref[kh * 3 + kw] * x[p, qh:qh + oh, qw:qw + ow]
    # v2[0][0][0][0] = 0.1, then += 0.1, -= 0.2  ->  element (0,0) is exactly 0.0 in f32
    # (f32(0.1) + f32(0.1) == f32(0.2)); all other elements already carry the -0.1 via bias.
    row = lax.broadcasted_iota(jnp.int32, (oh, ow), 0)
    col = lax.broadcasted_iota(jnp.int32, (oh, ow), 1)
    o_ref[...] = jnp.where((row == 0) & (col == 0), jnp.float32(0.0), acc)


@jax.jit
def model_forward(x_nchw, weight, bias):
    N, C, H, W = x_nchw.shape
    KH, KW = weight.shape[2], weight.shape[3]
    SH, SW = 2, 2
    OH = (H - KH) // SH + 1
    OW = (W - KW) // SW + 1
    assert N == 1 and C == 1 and (KH, KW) == (3, 3) and H % 2 == 0 and W % 2 == 0

    # Single layout op (reshape + transpose of 100 elements) instead of the old
    # 9-scatter im2col build: split the input into its 4 parity sub-grids so the
    # stride-2 conv becomes contiguous slices inside the kernel.
    x_split = (
        x_nchw.reshape(H // 2, 2, W // 2, 2)
        .transpose(1, 3, 0, 2)
        .reshape(4, H // 2, W // 2)
        .astype(jnp.float32)
    )
    w_flat = weight.reshape(KH * KW).astype(jnp.float32)
    # Fold the elementwise post-ops (+0.1, -0.2) into the bias.
    b_adj = (bias.astype(jnp.float32) - jnp.float32(0.1)).reshape(1)

    out = pl.pallas_call(
        conv_post_kernel,
        out_shape=jax.ShapeDtypeStruct((OH, OW), jnp.float32),
        in_specs=[
            pl.BlockSpec((4, H // 2, W // 2), lambda: (0, 0, 0)),
            pl.BlockSpec(memory_space=pltpu.MemorySpace.SMEM),
            pl.BlockSpec(memory_space=pltpu.MemorySpace.SMEM),
        ],
        out_specs=pl.BlockSpec((OH, OW), lambda: (0, 0)),
    )(x_split, w_flat, b_adj)

    return out.reshape(N, 1, OH, OW)


if __name__ == "__main__":
    key = jax.random.PRNGKey(0)
    kx, kw, kb = jax.random.split(key, 3)

    # Input per the module: x2 = torch.randn(1, 1, 10, 10)
    x2 = jax.random.normal(kx, (1, 1, 10, 10), jnp.float32)

    # Deterministic Conv2d(1,1,3,3) parameter init (PyTorch-style uniform bound).
    fan_in = 1 * 3 * 3
    bound = 1.0 / (fan_in ** 0.5)
    weight = jax.random.uniform(kw, (1, 1, 3, 3), jnp.float32, -bound, bound)
    bias = jax.random.uniform(kb, (1,), jnp.float32, -bound, bound)

    out = model_forward(x2, weight, bias)
    out = jax.block_until_ready(out)

    # Pure-JAX reference for sanity.
    ref = lax.conv_general_dilated(
        x2, weight, window_strides=(2, 2), padding="VALID",
        dimension_numbers=("NCHW", "OIHW", "NCHW")) + bias[0]
    ref = ref.at[0, 0, 0, 0].set(0.1)
    ref = ref + 0.1 - 0.2

    assert out.shape == (1, 1, 4, 4), out.shape
    assert jnp.allclose(out, ref, atol=1e-5), (out, ref)
    print("KERNEL_OK")
</pallas_src>

<mosaic_0001>
module attributes {stable_mosaic.version = 11 : i64} {
  func.func @conv_post_kernel(%arg0: memref<4x5x5xf32, #tpu.memory_space<vmem>>, %arg1: memref<9xf32, #tpu.memory_space<smem>>, %arg2: memref<1xf32, #tpu.memory_space<smem>>, %arg3: memref<4x4xf32, #tpu.memory_space<vmem>>) attributes {dimension_semantics = [], scalar_prefetch = 0 : i64, scratch_operands = 0 : i64, tpu.core_type = #tpu.core_type<tc>} {
    %c0 = arith.constant 0 : index
    %c0_0 = arith.constant 0 : index
    %c0_1 = arith.constant 0 : index
    %0 = vector.load %arg0[%c0, %c0_0, %c0_1] : memref<4x5x5xf32, #tpu.memory_space<vmem>>, vector<4x5x5xf32>
    %c0_2 = arith.constant 0 : index
    %1 = memref.load %arg2[%c0_2] : memref<1xf32, #tpu.memory_space<smem>>
    %2 = vector.broadcast %1 : f32 to vector<4x4xf32>
    %c0_3 = arith.constant 0 : index
    %3 = memref.load %arg1[%c0_3] : memref<9xf32, #tpu.memory_space<smem>>
    %4 = vector.extract_strided_slice %0 {offsets = [0, 0, 0], sizes = [1, 4, 4], strides = [1, 1, 1]} : vector<4x5x5xf32> to vector<1x4x4xf32>
    %5 = vector.shape_cast %4 : vector<1x4x4xf32> to vector<4x4xf32>
    %6 = vector.broadcast %3 : f32 to vector<4x4xf32>
    %7 = arith.mulf %6, %5 : vector<4x4xf32>
    %8 = arith.addf %2, %7 : vector<4x4xf32>
    %c1 = arith.constant 1 : index
    %9 = memref.load %arg1[%c1] : memref<9xf32, #tpu.memory_space<smem>>
    %10 = vector.extract_strided_slice %0 {offsets = [1, 0, 0], sizes = [1, 4, 4], strides = [1, 1, 1]} : vector<4x5x5xf32> to vector<1x4x4xf32>
    %11 = vector.shape_cast %10 : vector<1x4x4xf32> to vector<4x4xf32>
    %12 = vector.broadcast %9 : f32 to vector<4x4xf32>
    %13 = arith.mulf %12, %11 : vector<4x4xf32>
    %14 = arith.addf %8, %13 : vector<4x4xf32>
    %c2 = arith.constant 2 : index
    %15 = memref.load %arg1[%c2] : memref<9xf32, #tpu.memory_space<smem>>
    %16 = vector.extract_strided_slice %0 {offsets = [0, 0, 1], sizes = [1, 4, 4], strides = [1, 1, 1]} : vector<4x5x5xf32> to vector<1x4x4xf32>
    %17 = vector.shape_cast %16 : vector<1x4x4xf32> to vector<4x4xf32>
    %18 = vector.broadcast %15 : f32 to vector<4x4xf32>
    %19 = arith.mulf %18, %17 : vector<4x4xf32>
    %20 = arith.addf %14, %19 : vector<4x4xf32>
    %c3 = arith.constant 3 : index
    %21 = memref.load %arg1[%c3] : memref<9xf32, #tpu.memory_space<smem>>
    %22 = vector.extract_strided_slice %0 {offsets = [2, 0, 0], sizes = [1, 4, 4], strides = [1, 1, 1]} : vector<4x5x5xf32> to vector<1x4x4xf32>
    %23 = vector.shape_cast %22 : vector<1x4x4xf32> to vector<4x4xf32>
    %24 = vector.broadcast %21 : f32 to vector<4x4xf32>
    %25 = arith.mulf %24, %23 : vector<4x4xf32>
    %26 = arith.addf %20, %25 : vector<4x4xf32>
    %c4 = arith.constant 4 : index
    %27 = memref.load %arg1[%c4] : memref<9xf32, #tpu.memory_space<smem>>
    %28 = vector.extract_strided_slice %0 {offsets = [3, 0, 0], sizes = [1, 4, 4], strides = [1, 1, 1]} : vector<4x5x5xf32> to vector<1x4x4xf32>
    %29 = vector.shape_cast %28 : vector<1x4x4xf32> to vector<4x4xf32>
    %30 = vector.broadcast %27 : f32 to vector<4x4xf32>
    %31 = arith.mulf %30, %29 : vector<4x4xf32>
    %32 = arith.addf %26, %31 : vector<4x4xf32>
    %c5 = arith.constant 5 : index
    %33 = memref.load %arg1[%c5] : memref<9xf32, #tpu.memory_space<smem>>
    %34 = vector.extract_strided_slice %0 {offsets = [2, 0, 1], sizes = [1, 4, 4], strides = [1, 1, 1]} : vector<4x5x5xf32> to vector<1x4x4xf32>
    %35 = vector.shape_cast %34 : vector<1x4x4xf32> to vector<4x4xf32>
    %36 = vector.broadcast %33 : f32 to vector<4x4xf32>
    %37 = arith.mulf %36, %35 : vector<4x4xf32>
    %38 = arith.addf %32, %37 : vector<4x4xf32>
    %c6 = arith.constant 6 : index
    %39 = memref.load %arg1[%c6] : memref<9xf32, #tpu.memory_space<smem>>
    %40 = vector.extract_strided_slice %0 {offsets = [0, 1, 0], sizes = [1, 4, 4], strides = [1, 1, 1]} : vector<4x5x5xf32> to vector<1x4x4xf32>
    %41 = vector.shape_cast %40 : vector<1x4x4xf32> to vector<4x4xf32>
    %42 = vector.broadcast %39 : f32 to vector<4x4xf32>
    %43 = arith.mulf %42, %41 : vector<4x4xf32>
    %44 = arith.addf %38, %43 : vector<4x4xf32>
    %c7 = arith.constant 7 : index
    %45 = memref.load %arg1[%c7] : memref<9xf32, #tpu.memory_space<smem>>
    %46 = vector.extract_strided_slice %0 {offsets = [1, 1, 0], sizes = [1, 4, 4], strides = [1, 1, 1]} : vector<4x5x5xf32> to vector<1x4x4xf32>
    %47 = vector.shape_cast %46 : vector<1x4x4xf32> to vector<4x4xf32>
    %48 = vector.broadcast %45 : f32 to vector<4x4xf32>
    %49 = arith.mulf %48, %47 : vector<4x4xf32>
    %50 = arith.addf %44, %49 : vector<4x4xf32>
    %c8 = arith.constant 8 : index
    %51 = memref.load %arg1[%c8] : memref<9xf32, #tpu.memory_space<smem>>
    %52 = vector.extract_strided_slice %0 {offsets = [0, 1, 1], sizes = [1, 4, 4], strides = [1, 1, 1]} : vector<4x5x5xf32> to vector<1x4x4xf32>
    %53 = vector.shape_cast %52 : vector<1x4x4xf32> to vector<4x4xf32>
    %54 = vector.broadcast %51 : f32 to vector<4x4xf32>
    %55 = arith.mulf %54, %53 : vector<4x4xf32>
    %56 = arith.addf %50, %55 : vector<4x4xf32>
    %57 = tpu.iota {dimensions = array<i32: 0>} : vector<4x4xi32>
    %58 = tpu.iota {dimensions = array<i32: 1>} : vector<4x4xi32>
    %c0_i32 = arith.constant 0 : i32
    %59 = vector.broadcast %c0_i32 : i32 to vector<4x4xi32>
    %60 = arith.cmpi eq, %57, %59 : vector<4x4xi32>
    %c0_i32_4 = arith.constant 0 : i32
    %61 = vector.broadcast %c0_i32_4 : i32 to vector<4x4xi32>
    %62 = arith.cmpi eq, %58, %61 : vector<4x4xi32>
    %63 = arith.andi %60, %62 : vector<4x4xi1>
    %cst = arith.constant 0.000000e+00 : f32
    %64 = vector.broadcast %cst : f32 to vector<4x4xf32>
    %65 = arith.select %63, %64, %56 : vector<4x4xi1>, vector<4x4xf32>
    %c0_5 = arith.constant 0 : index
    %c0_6 = arith.constant 0 : index
    %66 = vector.load %arg3[%c0_5, %c0_6] : memref<4x4xf32, #tpu.memory_space<vmem>>, vector<4x4xf32>
    tpu.vector_store %arg3[%c0_5, %c0_6], %65 {strides = array<i32>} : memref<4x4xf32, #tpu.memory_space<vmem>>, vector<4x4xf32>,
    return
  }
}

</mosaic_0001>

<bundles_post_ra>
// kernel: model_forward.1
= control target key start
LH: loop header
LB: loop body
LE: loop exit
PB: predicated region body
PF: predicated region fallthrough
CT: control target
= control target key end

     0   :  { %9 = vsyncpa [#allocation5], 0  ;;  %s206_s0 = inlined_call_operand.vmem [shape: f32[4,5,5], index: 0, kind: input, shape index: {}]   ;;  %s207_s1 = inlined_call_operand.vmem [shape: f32[9], index: 1, kind: input, shape index: {}]   ;;  %s208_s2 = inlined_call_operand.<no memory space> [shape: f32[1], index: 2, kind: input, shape index: {}]   ;;  %s209_s3 = inlined_call_operand.hbm [shape: f32[4,4], index: 3, kind: output, shape index: {}]  }
   0x1   :  { %10 = vsyncpa [#allocation4], 0  ;;  %s19_s14 = sshll.u32 %s207_s1, 4  ;;  %s20_s14 = int_to_ptr.vmem [resolvable:$true] %s19_s14 }
   0x2   :  { %s126_s15 = scalar_lea.vmem %s20_s14, 16  ;;  %p131_p1 = scmp.lt.s32.totalorder %s20_s14, %s20_s14 }
   0x3   :  { %p127_p0 = scmp.ne.s32.totalorder %s20_s14, %s126_s15  ;;  %p132_p2 = scmp.lt.s32.totalorder %s126_s15, %s126_s15 }
   0x5   :  { %p133_p3 = por %p132_p2, %p131_p1 }
   0x7   :  { %p134_p4 = pnand %p133_p3, %p127_p0 }
   0x9   :  { %137 = shalt.err (!%p134_p4)
}
   0xa   :  { %s162_s16 = smov [#allocation3]  }
   0xb   :  { %22 = dma.vmem_to_smem %s20_s14, 16, %s162_s16, [#allocation5]  }
   0xc   :  { %158 = dma.done.wait [#allocation5], 16  }
   0xd   :  { %159 = vsyncadd [#allocation5], 4294967280 }
   0xe   :  { %28 = sfence }
   0xf   :  { %s116_s17 = sld [smem:[#allocation3 + $0x2]]  ;;  %v29_v0 = vld [vmem:[%s206_s0] sm:$0x1f]  ;;  %v31_v2 = vld [vmem:[%s206_s0 + $0x10] sm:$0x1f]  ;;  %s163_s23 = smov 127   ;;  %v34_v12 = vstv %s208_s2  ;;  %v90_v27 = vlaneseq }
  0x10   :  { %s119_s18 = sld [smem:[#allocation3 + $0x5]]  ;;  %v30_v11 = vld [vmem:[%s206_s0 + $0x8] sm:$0x1f]  ;;  %v32_v18 = vld [vmem:[%s206_s0 + $0x18] sm:$0x1f]  ;;  %s164_s0 = smov [#allocation6]  }
  0x11   :  { %s122_s19 = sld [smem:[#allocation3 + $0x8]]  ;;  %v91_v33 = vshrl.u32 %v90_v27, 7  ;;  %v93_v34 = vand.u32 127, %v90_v27  ;;  %s106_s2 = sshll.u32 %s164_s0, 4  ;;  %vm98_vm3 = vcmask 27648   ;;  %s107_s2 = int_to_ptr.vmem [resolvable:$true] %s106_s2 }
  0x12   :  { %s35_s24 = sld [smem:[#allocation3]]  ;;  %s138_s9 = scalar_lea.vmem %s107_s2, 64 }
  0x13   :  { %s115_s25 = sld [smem:[#allocation3 + $0x1]]  ;;  %vm94_vm0 = vcmp.eq.s32.totalorder %v91_v33, 0  ;;  %vm95_vm1 = vcmp.eq.s32.totalorder %v93_v34, 0  ;;  %p139_p5 = scmp.ne.s32.totalorder %s107_s2, %s138_s9 }
  0x14   :  { %s117_s26 = sld [smem:[#allocation3 + $0x3]]  ;;  %vm96_vm2 = vmand %vm94_vm0, %vm95_vm1  ;;  %p143_p6 = scmp.lt.s32.totalorder %s107_s2, %s107_s2 }
  0x15   :  { %v44_v1 = vstv %s116_s17  ;;  %s118_s27 = sld [smem:[#allocation3 + $0x4]]  ;;  %p144_p7 = scmp.lt.s32.totalorder %s138_s9, %s138_s9 }
  0x16   :  { %v45_v3 = vmul.f32 %v44_v1, %v29_v0  ;;  %v60_v4 = vstv %s119_s18  ;;  %s120_s5 = sld [smem:[#allocation3 + $0x6]] }
  0x17   :  { %v82_v5 = vstv %s122_s19  ;;  %v61_v6 = vmul.f32 %v60_v4, %v31_v2  ;;  %s121_s6 = sld [smem:[#allocation3 + $0x7]]  ;;  %p145_p8 = por %p144_p7, %p143_p6 }
  0x18   :  { %47 = vrot.lane.b32.xlu0 %v45_v3, %s163_s23  ;;  %v83_v7 = vmul.f32 %v82_v5, %v29_v0  ;;  %v36_v9 = vstv %s35_s24 }
  0x19   :  { %v37_v10 = vmul.f32 %v36_v9, %v29_v0  ;;  %v40_v13 = vstv %s115_s25  ;;  %p146_p9 = pnand %p145_p8, %p139_p5 }
  0x1a   :  { %v85_v8 = vrot.slane %v83_v7, 1  ;;  %v41_v14 = vmul.f32 %v40_v13, %v30_v11  ;;  %v52_v16 = vstv %s117_s26 }
  0x1b   :  { %v38_v15 = vadd.f32 %v37_v10, %v34_v12  ;;  %v56_v19 = vstv %s118_s27  ;;  %v53_v21 = vmul.f32 %v52_v16, %v31_v2 }
  0x1c   :  { %63 = vrot.lane.b32.xlu0 %v61_v6, %s163_s23  ;;  %86 = vrot.lane.b32.xlu1 %v85_v8, %s163_s23  ;;  %v68_v20 = vstv %s120_s5  ;;  %v57_v25 = vmul.f32 %v56_v19, %v32_v18 }
  0x1d   :  { %v42_v17 = vadd.f32 %v41_v14, %v38_v15  ;;  %v75_v23 = vstv %s121_s6  ;;  %v69_v26 = vmul.f32 %v68_v20, %v29_v0 }
  0x1e   :  { %v76_v29 = vmul.f32 %v75_v23, %v30_v11 }
  0x1f   :  { %v71_v31 = vrot.slane %v69_v26, 1 }
  0x20   :  { %v78_v36 = vrot.slane %v76_v29, 1 }
  0x8a   :  { %v48_v22 = vpop.permute.xlu0 %47 }
  0x8b   :  { %v50_v24 = vadd.f32 %v48_v22, %v42_v17 }
  0x8d   :  { %v54_v28 = vadd.f32 %v53_v21, %v50_v24 }
  0x8e   :  { %v64_v30 = vpop.permute.xlu0 %63  ;;  %v87_v38 = vpop.permute.xlu1 %86 }
  0x8f   :  { %v58_v32 = vadd.f32 %v57_v25, %v54_v28 }
  0x91   :  { %v66_v35 = vadd.f32 %v64_v30, %v58_v32 }
  0x93   :  { %v73_v37 = vadd.f32 %v71_v31, %v66_v35 }
  0x95   :  { %v80_v39 = vadd.f32 %v78_v36, %v73_v37 }
  0x97   :  { %v89_v40 = vadd.f32 %v87_v38, %v80_v39 }
  0x99   :  { %v97_v41 = vsel %vm96_vm2, 0.0, %v89_v40 }
  0x9a   :  { %99 = vst.msk [vmem:[#allocation6] sm:$0xf] %vm98_vm3, %v97_v41 }
  0x9b   :  { %149 = shalt.err (!%p146_p9)
}
  0x9c   :  { %109 = dma.vmem_to_hbm [thread:$0]  %s107_s2, 64, %s209_s3, [#allocation4]  }
  0x9d   :  { %160 = dma.done.wait [#allocation4], 64  }
  0x9e   :  { %161 = vsyncadd [#allocation4], 4294967232 }
  0x9f   :  { %113 = vsyncpa [#allocation4], 1 }
  0xa0   :  { %114 = vsyncpa [#allocation5], 1 }

</bundles_post_ra>
